<compile_context>
chip_gen: v5e
topology: v5e:2x2
jax: 0.10.0
libtpu: 0.0.40
codegen_flags: <defaults>
</compile_context>

<pallas_src>
import functools

import jax
import jax.numpy as jnp
from jax.experimental import pallas as pl
from jax.experimental.pallas import tpu as pltpu


def bert_self_output_kernel(x_ref, w_ref, b_ref, res_ref, gamma_ref, beta_ref,
                            o_ref, *, eps):
    # x_ref:   (tm, H)       hidden_states tile (native dtype, e.g. bf16)
    # w_ref:   (H_out, H_in) dense weight in PyTorch (out, in) layout
    # b_ref:   (1, H)        dense bias
    # res_ref: (tm, H)       residual (input_tensor) tile
    # gamma_ref / beta_ref: (1, H) LayerNorm affine params
    x = x_ref[...]
    w = w_ref[...]

    # dense: hidden @ W^T -- contract on the "in" dim of both operands so the
    # wrapper never transposes the weight in HBM. f32 accumulation on the MXU.
    h = jax.lax.dot_general(
        x, w,
        dimension_numbers=(((1,), (1,)), ((), ())),
        preferred_element_type=jnp.float32,
    )

    # TODO(synk): dropout omitted (inference / p=0 behaviour); add a
    # pltpu.prng_seed/prng_random_bits mask for training-mode dropout.

    # Hoisted single casts of the broadcast params.
    bias = b_ref[...].astype(jnp.float32)
    gamma = gamma_ref[...].astype(jnp.float32)
    beta = beta_ref[...].astype(jnp.float32)

    # bias + residual add, all in f32
    y = h + bias + res_ref[...].astype(jnp.float32)

    # LayerNorm over the hidden (lane) axis, f32 math.
    mean = jnp.mean(y, axis=-1, keepdims=True)
    centered = y - mean
    var = jnp.mean(centered * centered, axis=-1, keepdims=True)
    inv = jax.lax.rsqrt(var + eps)
    out = centered * inv * gamma + beta

    o_ref[...] = out.astype(o_ref.dtype)


def bert_self_output(hidden_states, input_tensor, weight, bias, gamma, beta,
                     *, eps=1e-12, tm=512, single_buffer_weight=True):
    """hidden_states, input_tensor: (B, S, H); weight: (H, H) PyTorch (out, in) layout."""
    B, S, H = hidden_states.shape
    M = B * S

    x2d = hidden_states.reshape(M, H)
    r2d = input_tensor.reshape(M, H)

    # Row-tile selection: single full-size tile for small inputs; otherwise tile
    # by tm and pad rows only if M does not divide (common BERT shapes divide,
    # so no extra HBM copy in the hot path).
    if M <= tm:
        tm_eff, m_pad = M, M
    else:
        tm_eff = tm
        m_pad = ((M + tm - 1) // tm) * tm
        if m_pad != M:
            pad = m_pad - M
            x2d = jnp.pad(x2d, ((0, pad), (0, 0)))
            r2d = jnp.pad(r2d, ((0, pad), (0, 0)))

    b2d = bias.reshape(1, H)
    g2d = gamma.reshape(1, H)
    be2d = beta.reshape(1, H)

    kernel = functools.partial(bert_self_output_kernel, eps=eps)

    def make_call(weight_spec):
        return pl.pallas_call(
            kernel,
            out_shape=jax.ShapeDtypeStruct((m_pad, H), hidden_states.dtype),
            grid_spec=pltpu.PrefetchScalarGridSpec(
                num_scalar_prefetch=0,
                grid=(m_pad // tm_eff,),
                in_specs=[
                    pl.BlockSpec((tm_eff, H), lambda i: (i, 0)),   # hidden_states tile
                    weight_spec,                                   # W (out, in), resident
                    pl.BlockSpec((1, H), lambda i: (0, 0)),        # bias
                    pl.BlockSpec((tm_eff, H), lambda i: (i, 0)),   # residual tile
                    pl.BlockSpec((1, H), lambda i: (0, 0)),        # gamma
                    pl.BlockSpec((1, H), lambda i: (0, 0)),        # beta
                ],
                out_specs=pl.BlockSpec((tm_eff, H), lambda i: (i, 0)),
            ),
            compiler_params=pltpu.CompilerParams(
                dimension_semantics=("parallel",),
                vmem_limit_bytes=48 * 1024 * 1024,  # headroom inside v7x 64 MiB/TC
            ),
        )

    args = (x2d, weight, b2d, r2d, g2d, be2d)

    out2d = None
    if single_buffer_weight:
        try:
            # Constant index_map => weight is fetched once; single-buffer it to
            # halve its VMEM footprint.
            ws = pl.BlockSpec((H, H), lambda i: (0, 0), pipeline_mode=pl.Buffered(1))
            out2d = make_call(ws)(*args)
        except Exception:
            out2d = None  # fall back to default (double-buffered) weight spec
    if out2d is None:
        out2d = make_call(pl.BlockSpec((H, H), lambda i: (0, 0)))(*args)

    if m_pad != M:
        out2d = out2d[:M]
    return out2d.reshape(B, S, H)


def reference(hidden_states, input_tensor, weight, bias, gamma, beta, eps=1e-12):
    x = hidden_states.astype(jnp.float32)
    r = input_tensor.astype(jnp.float32)
    w = weight.astype(jnp.float32)
    b = bias.astype(jnp.float32)
    h = jnp.einsum("bsh,oh->bso", x, w) + b
    y = h + r
    mean = jnp.mean(y, axis=-1, keepdims=True)
    var = jnp.mean((y - mean) ** 2, axis=-1, keepdims=True)
    normed = (y - mean) * jax.lax.rsqrt(var + eps)
    return normed * gamma.astype(jnp.float32) + beta.astype(jnp.float32)


def _make_inputs(key, B, S, H, dtype):
    k1, k2, k3, k4 = jax.random.split(key, 4)
    hidden_states = jax.random.normal(k1, (B, S, H), dtype=jnp.float32).astype(dtype)
    input_tensor = jax.random.normal(k2, (B, S, H), dtype=jnp.float32).astype(dtype)
    bound = 1.0 / (H ** 0.5)
    weight = jax.random.uniform(k3, (H, H), minval=-bound, maxval=bound,
                                dtype=jnp.float32).astype(dtype)
    bias = jax.random.uniform(k4, (H,), minval=-bound, maxval=bound,
                              dtype=jnp.float32).astype(dtype)
    gamma = jnp.ones((H,), dtype=dtype)
    beta = jnp.zeros((H,), dtype=dtype)
    return hidden_states, input_tensor, weight, bias, gamma, beta


if __name__ == "__main__":
    eps = 1e-12
    key = jax.random.PRNGKey(0)
    k_f32, k_bf16, k_rag = jax.random.split(key, 3)

    # ---- small f32 test (module-consistent shapes: batch=2, seq=8, hidden=32) ----
    B, S, H = 2, 8, 32
    hs, it, w, b, g, be = _make_inputs(k_f32, B, S, H, jnp.float32)
    out = bert_self_output(hs, it, w, b, g, be, eps=eps)
    out = jax.block_until_ready(out)
    ref = reference(hs, it, w, b, g, be, eps=eps)
    assert out.shape == (B, S, H)
    assert jnp.allclose(out, ref, atol=1e-5, rtol=1e-5), "f32 mismatch vs reference"

    # ---- bf16 test (native bf16 MXU operands, f32 accumulation + LN) ----
    B2, S2, H2 = 2, 512, 128
    hs2, it2, w2, b2, g2, be2 = _make_inputs(k_bf16, B2, S2, H2, jnp.bfloat16)
    out2 = bert_self_output(hs2, it2, w2, b2, g2, be2, eps=eps)
    out2 = jax.block_until_ready(out2)
    ref2 = reference(hs2, it2, w2, b2, g2, be2, eps=eps)
    assert out2.shape == (B2, S2, H2)
    assert jnp.allclose(out2.astype(jnp.float32), ref2, atol=5e-2, rtol=5e-2), \
        "bf16 mismatch vs reference"

    # ---- ragged test (M > tm, padding path exercised) ----
    B3, S3, H3 = 3, 200, 128
    hs3, it3, w3, b3, g3, be3 = _make_inputs(k_rag, B3, S3, H3, jnp.float32)
    out3 = bert_self_output(hs3, it3, w3, b3, g3, be3, eps=eps, tm=512)
    out3 = jax.block_until_ready(out3)
    ref3 = reference(hs3, it3, w3, b3, g3, be3, eps=eps)
    assert out3.shape == (B3, S3, H3)
    assert jnp.allclose(out3, ref3, atol=1e-4, rtol=1e-4), "ragged mismatch vs reference"

    print("KERNEL_OK")
</pallas_src>

<mosaic_0001>
module attributes {stable_mosaic.version = 11 : i64} {
  func.func @bert_self_output_kernel(%arg0: i32, %arg1: memref<16x32xf32, #tpu.memory_space<vmem>>, %arg2: memref<32x32xf32, #tpu.memory_space<vmem>>, %arg3: memref<1x32xf32, #tpu.memory_space<vmem>>, %arg4: memref<16x32xf32, #tpu.memory_space<vmem>>, %arg5: memref<1x32xf32, #tpu.memory_space<vmem>>, %arg6: memref<1x32xf32, #tpu.memory_space<vmem>>, %arg7: memref<16x32xf32, #tpu.memory_space<vmem>>) attributes {dimension_semantics = [#tpu.dimension_semantics<parallel>], iteration_bounds = array<i64: 1>, scalar_prefetch = 0 : i64, scratch_operands = 0 : i64, tpu.core_type = #tpu.core_type<tc>, window_params = [{transform_indices = @transform_0, window_bounds = array<i64: 16, 32>}, {pipeline_mode = #tpu.pipeline_mode<synchronous>, transform_indices = @transform_1, window_bounds = array<i64: 32, 32>}, {pipeline_mode = #tpu.pipeline_mode<synchronous>, transform_indices = @transform_2, window_bounds = array<i64: 1, 32>}, {transform_indices = @transform_3, window_bounds = array<i64: 16, 32>}, {pipeline_mode = #tpu.pipeline_mode<synchronous>, transform_indices = @transform_4, window_bounds = array<i64: 1, 32>}, {pipeline_mode = #tpu.pipeline_mode<synchronous>, transform_indices = @transform_5, window_bounds = array<i64: 1, 32>}, {transform_indices = @transform_6, window_bounds = array<i64: 16, 32>}]} {
    %c0 = arith.constant 0 : index
    %c0_0 = arith.constant 0 : index
    %0 = vector.load %arg1[%c0, %c0_0] : memref<16x32xf32, #tpu.memory_space<vmem>>, vector<16x32xf32>
    %c0_1 = arith.constant 0 : index
    %c0_2 = arith.constant 0 : index
    %1 = vector.load %arg2[%c0_1, %c0_2] : memref<32x32xf32, #tpu.memory_space<vmem>>, vector<32x32xf32>
    %cst = arith.constant dense<0.000000e+00> : vector<16x32xf32>
    %2 = tpu.matmul %0, %1, %cst {dimension_numbers = #tpu.dot_dimension_numbers<[1], [1], [0], [0], [0, 0, 1, 0], [], []>} : vector<16x32xf32>, vector<32x32xf32>, vector<16x32xf32> -> vector<16x32xf32>
    %c0_3 = arith.constant 0 : index
    %c0_4 = arith.constant 0 : index
    %3 = vector.load %arg3[%c0_3, %c0_4] : memref<1x32xf32, #tpu.memory_space<vmem>>, vector<1x32xf32>
    %c0_5 = arith.constant 0 : index
    %c0_6 = arith.constant 0 : index
    %4 = vector.load %arg5[%c0_5, %c0_6] : memref<1x32xf32, #tpu.memory_space<vmem>>, vector<1x32xf32>
    %c0_7 = arith.constant 0 : index
    %c0_8 = arith.constant 0 : index
    %5 = vector.load %arg6[%c0_7, %c0_8] : memref<1x32xf32, #tpu.memory_space<vmem>>, vector<1x32xf32>
    %6 = vector.broadcast %3 : vector<1x32xf32> to vector<16x32xf32>
    %7 = arith.addf %2, %6 : vector<16x32xf32>
    %c0_9 = arith.constant 0 : index
    %c0_10 = arith.constant 0 : index
    %8 = vector.load %arg4[%c0_9, %c0_10] : memref<16x32xf32, #tpu.memory_space<vmem>>, vector<16x32xf32>
    %9 = arith.addf %7, %8 : vector<16x32xf32>
    %cst_11 = arith.constant dense<0.000000e+00> : vector<16xf32>
    %10 = vector.multi_reduction <add>, %9, %cst_11 [1] : vector<16x32xf32> to vector<16xf32>
    %11 = vector.shape_cast %10 : vector<16xf32> to vector<16x1xf32>
    %cst_12 = arith.constant 3.200000e+01 : f32
    %12 = vector.broadcast %cst_12 : f32 to vector<16x1xf32>
    %13 = arith.divf %11, %12 : vector<16x1xf32>
    %14 = vector.broadcast %13 : vector<16x1xf32> to vector<16x32xf32>
    %15 = arith.subf %9, %14 : vector<16x32xf32>
    %16 = arith.mulf %15, %15 : vector<16x32xf32>
    %cst_13 = arith.constant dense<0.000000e+00> : vector<16xf32>
    %17 = vector.multi_reduction <add>, %16, %cst_13 [1] : vector<16x32xf32> to vector<16xf32>
    %18 = vector.shape_cast %17 : vector<16xf32> to vector<16x1xf32>
    %cst_14 = arith.constant 3.200000e+01 : f32
    %19 = vector.broadcast %cst_14 : f32 to vector<16x1xf32>
    %20 = arith.divf %18, %19 : vector<16x1xf32>
    %cst_15 = arith.constant 9.99999996E-13 : f32
    %21 = vector.broadcast %cst_15 : f32 to vector<16x1xf32>
    %22 = arith.addf %20, %21 : vector<16x1xf32>
    %23 = math.rsqrt %22 : vector<16x1xf32>
    %24 = vector.broadcast %23 : vector<16x1xf32> to vector<16x32xf32>
    %25 = arith.mulf %15, %24 : vector<16x32xf32>
    %26 = vector.broadcast %4 : vector<1x32xf32> to vector<16x32xf32>
    %27 = arith.mulf %25, %26 : vector<16x32xf32>
    %28 = vector.broadcast %5 : vector<1x32xf32> to vector<16x32xf32>
    %29 = arith.addf %27, %28 : vector<16x32xf32>
    %c0_16 = arith.constant 0 : index
    %c0_17 = arith.constant 0 : index
    %30 = vector.load %arg7[%c0_16, %c0_17] : memref<16x32xf32, #tpu.memory_space<vmem>>, vector<16x32xf32>
    tpu.vector_store %arg7[%c0_16, %c0_17], %29 {strides = array<i32>} : memref<16x32xf32, #tpu.memory_space<vmem>>, vector<16x32xf32>,
    return
  }
  func.func @transform_0(%arg0: i32) -> (i32, i32) {
    %c0_i32 = arith.constant 0 : i32
    %c0_i32_0 = arith.constant 0 : i32
    return %arg0, %c0_i32 : i32, i32
  }
  func.func @transform_1(%arg0: i32) -> (i32, i32) {
    %c0_i32 = arith.constant 0 : i32
    %c0_i32_0 = arith.constant 0 : i32
    %c0_i32_1 = arith.constant 0 : i32
    return %c0_i32, %c0_i32_0 : i32, i32
  }
  func.func @transform_2(%arg0: i32) -> (i32, i32) {
    %c0_i32 = arith.constant 0 : i32
    %c0_i32_0 = arith.constant 0 : i32
    %c0_i32_1 = arith.constant 0 : i32
    return %c0_i32, %c0_i32_0 : i32, i32
  }
  func.func @transform_3(%arg0: i32) -> (i32, i32) {
    %c0_i32 = arith.constant 0 : i32
    %c0_i32_0 = arith.constant 0 : i32
    return %arg0, %c0_i32 : i32, i32
  }
  func.func @transform_4(%arg0: i32) -> (i32, i32) {
    %c0_i32 = arith.constant 0 : i32
    %c0_i32_0 = arith.constant 0 : i32
    %c0_i32_1 = arith.constant 0 : i32
    return %c0_i32, %c0_i32_0 : i32, i32
  }
  func.func @transform_5(%arg0: i32) -> (i32, i32) {
    %c0_i32 = arith.constant 0 : i32
    %c0_i32_0 = arith.constant 0 : i32
    %c0_i32_1 = arith.constant 0 : i32
    return %c0_i32, %c0_i32_0 : i32, i32
  }
  func.func @transform_6(%arg0: i32) -> (i32, i32) {
    %c0_i32 = arith.constant 0 : i32
    %c0_i32_0 = arith.constant 0 : i32
    return %arg0, %c0_i32 : i32, i32
  }
}

module attributes {stable_mosaic.version = 11 : i64} {
  func.func @bert_self_output_kernel(%arg0: i32, %arg1: memref<16x32xf32, #tpu.memory_space<vmem>>, %arg2: memref<32x32xf32, #tpu.memory_space<vmem>>, %arg3: memref<1x32xf32, #tpu.memory_space<vmem>>, %arg4: memref<16x32xf32, #tpu.memory_space<vmem>>, %arg5: memref<1x32xf32, #tpu.memory_space<vmem>>, %arg6: memref<1x32xf32, #tpu.memory_space<vmem>>, %arg7: memref<16x32xf32, #tpu.memory_space<vmem>>) attributes {dimension_semantics = [#tpu.dimension_semantics<parallel>], iteration_bounds = array<i64: 1>, scalar_prefetch = 0 : i64, scratch_operands = 0 : i64, tpu.core_type = #tpu.core_type<tc>, window_params = [{transform_indices = @transform_0, window_bounds = array<i64: 16, 32>}, {pipeline_mode = #tpu.pipeline_mode<synchronous>, transform_indices = @transform_1, window_bounds = array<i64: 32, 32>}, {pipeline_mode = #tpu.pipeline_mode<synchronous>, transform_indices = @transform_2, window_bounds = array<i64: 1, 32>}, {transform_indices = @transform_3, window_bounds = array<i64: 16, 32>}, {pipeline_mode = #tpu.pipeline_mode<synchronous>, transform_indices = @transform_4, window_bounds = array<i64: 1, 32>}, {pipeline_mode = #tpu.pipeline_mode<synchronous>, transform_indices = @transform_5, window_bounds = array<i64: 1, 32>}, {transform_indices = @transform_6, window_bounds = array<i64: 16, 32>}]} {
    %c0 = arith.constant 0 : index
    %c0_0 = arith.constant 0 : index
    %0 = vector.load %arg1[%c0, %c0_0] : memref<16x32xf32, #tpu.memory_space<vmem>>, vector<16x32xf32>
    %c0_1 = arith.constant 0 : index
    %c0_2 = arith.constant 0 : index
    %1 = vector.load %arg2[%c0_1, %c0_2] : memref<32x32xf32, #tpu.memory_space<vmem>>, vector<32x32xf32>
    %cst = arith.constant dense<0.000000e+00> : vector<16x32xf32>
    %2 = tpu.matmul %0, %1, %cst {dimension_numbers = #tpu.dot_dimension_numbers<[1], [1], [0], [0], [0, 0, 1, 0], [], []>} : vector<16x32xf32>, vector<32x32xf32>, vector<16x32xf32> -> vector<16x32xf32>
    %c0_3 = arith.constant 0 : index
    %c0_4 = arith.constant 0 : index
    %3 = vector.load %arg3[%c0_3, %c0_4] : memref<1x32xf32, #tpu.memory_space<vmem>>, vector<1x32xf32>
    %c0_5 = arith.constant 0 : index
    %c0_6 = arith.constant 0 : index
    %4 = vector.load %arg5[%c0_5, %c0_6] : memref<1x32xf32, #tpu.memory_space<vmem>>, vector<1x32xf32>
    %c0_7 = arith.constant 0 : index
    %c0_8 = arith.constant 0 : index
    %5 = vector.load %arg6[%c0_7, %c0_8] : memref<1x32xf32, #tpu.memory_space<vmem>>, vector<1x32xf32>
    %6 = vector.broadcast %3 : vector<1x32xf32> to vector<16x32xf32>
    %7 = arith.addf %2, %6 : vector<16x32xf32>
    %c0_9 = arith.constant 0 : index
    %c0_10 = arith.constant 0 : index
    %8 = vector.load %arg4[%c0_9, %c0_10] : memref<16x32xf32, #tpu.memory_space<vmem>>, vector<16x32xf32>
    %9 = arith.addf %7, %8 : vector<16x32xf32>
    %cst_11 = arith.constant dense<0.000000e+00> : vector<16xf32>
    %10 = vector.multi_reduction <add>, %9, %cst_11 [1] : vector<16x32xf32> to vector<16xf32>
    %11 = vector.shape_cast %10 : vector<16xf32> to vector<16x1xf32>
    %cst_12 = arith.constant 3.200000e+01 : f32
    %12 = vector.broadcast %cst_12 : f32 to vector<16x1xf32>
    %13 = arith.divf %11, %12 : vector<16x1xf32>
    %14 = vector.broadcast %13 : vector<16x1xf32> to vector<16x32xf32>
    %15 = arith.subf %9, %14 : vector<16x32xf32>
    %16 = arith.mulf %15, %15 : vector<16x32xf32>
    %cst_13 = arith.constant dense<0.000000e+00> : vector<16xf32>
    %17 = vector.multi_reduction <add>, %16, %cst_13 [1] : vector<16x32xf32> to vector<16xf32>
    %18 = vector.shape_cast %17 : vector<16xf32> to vector<16x1xf32>
    %cst_14 = arith.constant 3.200000e+01 : f32
    %19 = vector.broadcast %cst_14 : f32 to vector<16x1xf32>
    %20 = arith.divf %18, %19 : vector<16x1xf32>
    %cst_15 = arith.constant 9.99999996E-13 : f32
    %21 = vector.broadcast %cst_15 : f32 to vector<16x1xf32>
    %22 = arith.addf %20, %21 : vector<16x1xf32>
    %23 = math.rsqrt %22 : vector<16x1xf32>
    %24 = vector.broadcast %23 : vector<16x1xf32> to vector<16x32xf32>
    %25 = arith.mulf %15, %24 : vector<16x32xf32>
    %26 = vector.broadcast %4 : vector<1x32xf32> to vector<16x32xf32>
    %27 = arith.mulf %25, %26 : vector<16x32xf32>
    %28 = vector.broadcast %5 : vector<1x32xf32> to vector<16x32xf32>
    %29 = arith.addf %27, %28 : vector<16x32xf32>
    %c0_16 = arith.constant 0 : index
    %c0_17 = arith.constant 0 : index
    %30 = vector.load %arg7[%c0_16, %c0_17] : memref<16x32xf32, #tpu.memory_space<vmem>>, vector<16x32xf32>
    tpu.vector_store %arg7[%c0_16, %c0_17], %29 {strides = array<i32>} : memref<16x32xf32, #tpu.memory_space<vmem>>, vector<16x32xf32>,
    return
  }
  func.func @transform_0(%arg0: i32) -> (i32, i32) {
    %c0_i32 = arith.constant 0 : i32
    %c0_i32_0 = arith.constant 0 : i32
    return %arg0, %c0_i32 : i32, i32
  }
  func.func @transform_1(%arg0: i32) -> (i32, i32) {
    %c0_i32 = arith.constant 0 : i32
    %c0_i32_0 = arith.constant 0 : i32
    %c0_i32_1 = arith.constant 0 : i32
    return %c0_i32, %c0_i32_0 : i32, i32
  }
  func.func @transform_2(%arg0: i32) -> (i32, i32) {
    %c0_i32 = arith.constant 0 : i32
    %c0_i32_0 = arith.constant 0 : i32
    %c0_i32_1 = arith.constant 0 : i32
    return %c0_i32, %c0_i32_0 : i32, i32
  }
  func.func @transform_3(%arg0: i32) -> (i32, i32) {
    %c0_i32 = arith.constant 0 : i32
    %c0_i32_0 = arith.constant 0 : i32
    return %arg0, %c0_i32 : i32, i32
  }
  func.func @transform_4(%arg0: i32) -> (i32, i32) {
    %c0_i32 = arith.constant 0 : i32
    %c0_i32_0 = arith.constant 0 : i32
    %c0_i32_1 = arith.constant 0 : i32
    return %c0_i32, %c0_i32_0 : i32, i32
  }
  func.func @transform_5(%arg0: i32) -> (i32, i32) {
    %c0_i32 = arith.constant 0 : i32
    %c0_i32_0 = arith.constant 0 : i32
    %c0_i32_1 = arith.constant 0 : i32
    return %c0_i32, %c0_i32_0 : i32, i32
  }
  func.func @transform_6(%arg0: i32) -> (i32, i32) {
    %c0_i32 = arith.constant 0 : i32
    %c0_i32_0 = arith.constant 0 : i32
    return %arg0, %c0_i32 : i32, i32
  }
}

</mosaic_0001>

<bundles_post_ra>
// kernel: tpu_custom_call.1
= control target key start
LH: loop header
LB: loop body
LE: loop exit
PB: predicated region body
PF: predicated region fallthrough
CT: control target
= control target key end

     0   :  { %11 = vsyncpa [#allocation3], 0  ;;  %s431_s0 = inlined_call_operand.hbm [shape: f32[16,32], index: 0, kind: input, shape index: {}]   ;;  %s432_s1 = inlined_call_operand.hbm [shape: f32[32,32], index: 1, kind: input, shape index: {}]   ;;  %s433_s2 = inlined_call_operand.vmem [shape: f32[1,32], index: 2, kind: input, shape index: {}]   ;;  %s434_s3 = inlined_call_operand.hbm [shape: f32[16,32], index: 3, kind: input, shape index: {}]   ;;  %s435_s4 = inlined_call_operand.vmem [shape: f32[1,32], index: 4, kind: input, shape index: {}]   ;;  %s436_s5 = inlined_call_operand.vmem [shape: f32[1,32], index: 5, kind: input, shape index: {}]   ;;  %s437_s6 = inlined_call_operand.hbm [shape: f32[16,32], index: 6, kind: output, shape index: {}]  }
   0x1   :  { %12 = vsyncpa [#allocation6], 0 }
   0x2   :  { %13 = vsyncpa [#allocation4], 0  ;;  %s31_s23 = sshll.u32 %s432_s1, 4  ;;  %s340_s24 = smov [#allocation5]   ;;  %s32_s23 = int_to_ptr.hbm [resolvable:$true] %s31_s23 }
   0x3   :  { %s33_s25 = sshll.u32 %s340_s24, 4  ;;  %s18_s28 = sshll.u32 %s431_s0, 4  ;;  %s34_s25 = int_to_ptr.vmem [resolvable:$true] %s33_s25  ;;  %s19_s28 = int_to_ptr.hbm [resolvable:$true] %s18_s28 }
   0x4   :  { %s341_s29 = smov 128   ;;  %s342_s30 = smov 8  }
   0x5   :  { %39 = dma.hbm_to_vmem [thread:$0]  %s32_s23, 512, %s34_s25, [#allocation6], %s341_s29, %s341_s29, %s342_s30  }
   0x6   :  { %s343_s7 = smov [#allocation2]   ;;  %s46_s1 = sshll.u32 %s434_s3, 4  ;;  %s47_s1 = int_to_ptr.hbm [resolvable:$true] %s46_s1 }
   0x7   :  { %s20_s8 = sshll.u32 %s343_s7, 4  ;;  %s344_s0 = smov [#allocation7]   ;;  %s21_s8 = int_to_ptr.vmem [resolvable:$true] %s20_s8 }
   0x8   :  { %26 = dma.hbm_to_vmem [thread:$0]  %s19_s28, 256, %s21_s8, [#allocation3], %s341_s29, %s341_s29, %s342_s30  }
   0x9   :  { %s48_s11 = sshll.u32 %s344_s0, 4  ;;  %s49_s11 = int_to_ptr.vmem [resolvable:$true] %s48_s11 }
   0xa   :  { %54 = dma.hbm_to_vmem [thread:$0]  %s47_s1, 256, %s49_s11, [#allocation6], %s341_s29, %s341_s29, %s342_s30  }
   0xb   :  { %334 = dma.done.wait [#allocation3], 256  }
   0xc   :  { %335 = vsyncadd [#allocation3], 4294967040 }
   0xd   :  { %336 = dma.done.wait [#allocation6], 768  }
   0xe   :  { %337 = vsyncadd [#allocation6], 4294966528  ;;  %vm83_vm0 = vcmask 261120   ;;  %v76_v0 = vld [vmem:[#allocation5 + $0x18] sm:$0xff]  ;;  %v75_v1 = vld [vmem:[#allocation5 + $0x10] sm:$0xff]  ;;  %v345_v17 = vmov 32.0  }
   0xf   :  { %212 = vmatpush.xpose.msk.msra.mxu0 %vm83_vm0, %v76_v0  ;;  %218 = vmatpush.xpose.msk.msra.mxu1 %vm83_vm0, %v76_v0  ;;  %v74_v2 = vld [vmem:[#allocation5 + $0x8] sm:$0xff]  ;;  %v73_v3 = vld [vmem:[#allocation5] sm:$0xff]  ;;  %v71_v4 = vld [vmem:[#allocation2] sm:$0xff]  ;;  %232 = vrcp.f32 %v345_v17  ;;  %s198_s19 = sshll.u32 %s437_s6, 4  ;;  %s199_s19 = int_to_ptr.hbm [resolvable:$true] %s198_s19 }
  0x10   :  { %v72_v5 = vld [vmem:[#allocation2 + $0x8] sm:$0xff]  ;;  %v229_v6 = vld [vmem:[%s433_s2] ss:$0 sm:$0xff]  ;;  %v125_v8 = vld [vmem:[#allocation7] sm:$0xff] }
  0x11   :  { %v126_v13 = vld [vmem:[#allocation7 + $0x8] sm:$0xff]  ;;  %v230_v48 = vld [vmem:[%s435_s4] ss:$0 sm:$0xff]  ;;  %s346_s4 = smov [#allocation8]  }
  0x12   :  { %v231_v52 = vld [vmem:[%s436_s5] ss:$0 sm:$0xff]  ;;  %s196_s16 = sshll.u32 %s346_s4, 4  ;;  %s197_s16 = int_to_ptr.vmem [resolvable:$true] %s196_s16 }
  0x13   :  { %213 = vmatpush.xpose.msk.msra.mxu0 %vm83_vm0, %v75_v1  ;;  %219 = vmatpush.xpose.msk.msra.mxu1 %vm83_vm0, %v75_v1 }
  0x15   :  { %v233_v18 = vpop.eup %232 }
  0x16   :  { %v136_v19 = vmul.f32 32.0, %v233_v18  ;;  %vm140_vm1 = vweird.f32 %v233_v18 }
  0x17   :  { %214 = vmatpush.xpose.msk.msra.mxu0 %vm83_vm0, %v74_v2  ;;  %220 = vmatpush.xpose.msk.msra.mxu1 %vm83_vm0, %v74_v2 }
  0x18   :  { %v137_v20 = vsub.f32 1.0, %v136_v19 }
  0x1a   :  { %v138_v21 = vmul.f32 %v233_v18, %v137_v20 }
  0x1b   :  { %215 = vmatpush.xpose.msk.msra.mxu0 %vm83_vm0, %v73_v3  ;;  %221 = vmatpush.xpose.msk.msra.mxu1 %vm83_vm0, %v73_v3 }
  0x1c   :  { %v139_v22 = vadd.f32 %v233_v18, %v138_v21 }
  0x1e   :  { %216 = vmatmul.msk.f32.vlgmr.msra.gmra.mxu0 %vm83_vm0, %v71_v4  ;;  %217 = vmatmul.msk.f32.vlgmr.msra.gmra.mxu1 %vm83_vm0, %v72_v5  ;;  %v141_v23 = vsel %vm140_vm1, %v233_v18, %v139_v22 }
  0x9b   :  { %v119_v7 = vpop.f32.mrf.mxu0  ;;  %v122_v9 = vpop.f32.mrf.mxu1 }
  0x9c   :  { %v120_v10 = vadd.f32 %v229_v6, %v119_v7  ;;  %v123_v12 = vadd.f32 %v229_v6, %v122_v9 }
  0x9e   :  { %v127_v11 = vadd.f32 %v125_v8, %v120_v10  ;;  %v128_v15 = vadd.f32 %v126_v13, %v123_v12 }
  0xa0   :  { %v129_v14 = vsel %vm83_vm0, %v127_v11, 0.0  ;;  %v132_v16 = vsel %vm83_vm0, %v128_v15, 0.0 }
  0xa1   :  { %130 = vadd.xlane.f32.xlu0 %v129_v14 }
  0xa9   :  { %133 = vadd.xlane.f32.xlu0 %v132_v16 }
 0x114   :  { %v131_v24 = vpop.xlane.xlu0 %130 }
 0x115   :  { %v142_v25 = vmul.f32 %v141_v23, %v131_v24 }
 0x117   :  { %v144_v26 = vsub.f32 %v127_v11, %v142_v25 }
 0x119   :  { %v146_v27 = vmul.f32 %v144_v26, %v144_v26 }
 0x11b   :  { %v148_v28 = vsel %vm83_vm0, %v146_v27, 0.0 }
 0x11c   :  { %149 = vadd.xlane.f32.xlu1 %v148_v28  ;;  %v134_v29 = vpop.xlane.xlu0 %133 }
 0x11d   :  { %v143_v30 = vmul.f32 %v141_v23, %v134_v29 }
 0x11f   :  { %v145_v31 = vsub.f32 %v128_v15, %v143_v30 }
 0x121   :  { %v147_v32 = vmul.f32 %v145_v31, %v145_v31 }
 0x123   :  { %v151_v33 = vsel %vm83_vm0, %v147_v32, 0.0 }
 0x124   :  { %152 = vadd.xlane.f32.xlu1 %v151_v33 }
 0x18f   :  { %v150_v34 = vpop.xlane.xlu1 %149 }
 0x190   :  { %v154_v35 = vmul.f32 %v150_v34, %v141_v23 }
 0x192   :  { %v156_v36 = vadd.f32 1e-12, %v154_v35 }
 0x194   :  { %234 = vrsqrt.f32 %v156_v36  ;;  %vm164_vm3 = vweird.f32 %v156_v36 }
 0x197   :  { %v153_v37 = vpop.xlane.xlu1 %152 }
 0x198   :  { %v155_v38 = vmul.f32 %v153_v37, %v141_v23 }
 0x19a   :  { %v235_v39 = vpop.eup %234  ;;  %v157_v40 = vadd.f32 1e-12, %v155_v38 }
 0x19b   :  { %v159_v41 = vmul.f32 %v235_v39, %v156_v36  ;;  %vm165_vm2 = vweird.f32 %v235_v39 }
 0x19c   :  { %236 = vrsqrt.f32 %v157_v40  ;;  %vm166_vm4 = vmor %vm164_vm3, %vm165_vm2  ;;  %vm174_vm6 = vweird.f32 %v157_v40 }
 0x19d   :  { %v160_v42 = vmul.f32 %v235_v39, %v159_v41 }
 0x19f   :  { %v161_v43 = vmul.f32 0.5, %v160_v42 }
 0x1a1   :  { %v162_v44 = vsub.f32 1.5, %v161_v43 }
 0x1a2   :  { %v237_v45 = vpop.eup %236 }
 0x1a3   :  { %v163_v46 = vmul.f32 %v235_v39, %v162_v44  ;;  %v169_v47 = vmul.f32 %v237_v45, %v157_v40  ;;  %vm175_vm5 = vweird.f32 %v237_v45 }
 0x1a4   :  { %vm176_vm7 = vmor %vm174_vm6, %vm175_vm5 }
 0x1a5   :  { %v167_v49 = vsel %vm166_vm4, %v235_v39, %v163_v46  ;;  %v170_v50 = vmul.f32 %v237_v45, %v169_v47 }
 0x1a6   :  { %v178_v51 = vmul.f32 %v167_v49, %v144_v26 }
 0x1a7   :  { %v171_v53 = vmul.f32 0.5, %v170_v50 }
 0x1a8   :  { %v183_v54 = vmul.f32 %v230_v48, %v178_v51 }
 0x1a9   :  { %v172_v55 = vsub.f32 1.5, %v171_v53 }
 0x1aa   :  { %v188_v56 = vadd.f32 %v231_v52, %v183_v54 }
 0x1ab   :  { %v173_v57 = vmul.f32 %v237_v45, %v172_v55 }
 0x1ac   :  { %190 = vst.msk [vmem:[#allocation8] sm:$0xff] %vm83_vm0, %v188_v56 }
 0x1ad   :  { %v177_v58 = vsel %vm176_vm7, %v237_v45, %v173_v57 }
 0x1ae   :  { %v179_v59 = vmul.f32 %v177_v58, %v145_v31 }
 0x1b0   :  { %v184_v60 = vmul.f32 %v230_v48, %v179_v59 }
 0x1b2   :  { %v189_v61 = vadd.f32 %v231_v52, %v184_v60 }
 0x1b4   :  { %191 = vst.msk [vmem:[#allocation8 + $0x8] sm:$0xff] %vm83_vm0, %v189_v61 }
 0x1b5   :  { %204 = dma.vmem_to_hbm [thread:$0]  %s197_s16, 256, %s199_s19, [#allocation4], %s341_s29, %s341_s29, %s342_s30  }
 0x1b6   :  { %338 = dma.done.wait [#allocation4], 256  }
 0x1b7   :  { %339 = vsyncadd [#allocation4], 4294967040 }
 0x1b8   :  { %209 = vsyncpa [#allocation3], 1 }
 0x1b9   :  { %210 = vsyncpa [#allocation6], 1 }
 0x1ba   :  { %211 = vsyncpa [#allocation4], 1 }

// kernel: tpu_custom_call.1
= control target key start
LH: loop header
LB: loop body
LE: loop exit
PB: predicated region body
PF: predicated region fallthrough
CT: control target
= control target key end

     0   :  { %11 = vsyncpa [#allocation3], 0  ;;  %s431_s0 = inlined_call_operand.hbm [shape: f32[16,32], index: 0, kind: input, shape index: {}]   ;;  %s432_s1 = inlined_call_operand.hbm [shape: f32[32,32], index: 1, kind: input, shape index: {}]   ;;  %s433_s2 = inlined_call_operand.vmem [shape: f32[1,32], index: 2, kind: input, shape index: {}]   ;;  %s434_s3 = inlined_call_operand.hbm [shape: f32[16,32], index: 3, kind: input, shape index: {}]   ;;  %s435_s4 = inlined_call_operand.vmem [shape: f32[1,32], index: 4, kind: input, shape index: {}]   ;;  %s436_s5 = inlined_call_operand.vmem [shape: f32[1,32], index: 5, kind: input, shape index: {}]   ;;  %s437_s6 = inlined_call_operand.hbm [shape: f32[16,32], index: 6, kind: output, shape index: {}]  }
   0x1   :  { %12 = vsyncpa [#allocation6], 0 }
   0x2   :  { %13 = vsyncpa [#allocation4], 0  ;;  %s31_s23 = sshll.u32 %s432_s1, 4  ;;  %s340_s24 = smov [#allocation5]   ;;  %s32_s23 = int_to_ptr.hbm [resolvable:$true] %s31_s23 }
   0x3   :  { %s33_s25 = sshll.u32 %s340_s24, 4  ;;  %s18_s28 = sshll.u32 %s431_s0, 4  ;;  %s34_s25 = int_to_ptr.vmem [resolvable:$true] %s33_s25  ;;  %s19_s28 = int_to_ptr.hbm [resolvable:$true] %s18_s28 }
   0x4   :  { %s341_s29 = smov 128   ;;  %s342_s30 = smov 8  }
   0x5   :  { %39 = dma.hbm_to_vmem [thread:$0]  %s32_s23, 512, %s34_s25, [#allocation6], %s341_s29, %s341_s29, %s342_s30  }
   0x6   :  { %s343_s7 = smov [#allocation2]   ;;  %s46_s1 = sshll.u32 %s434_s3, 4  ;;  %s47_s1 = int_to_ptr.hbm [resolvable:$true] %s46_s1 }
   0x7   :  { %s20_s8 = sshll.u32 %s343_s7, 4  ;;  %s344_s0 = smov [#allocation7]   ;;  %s21_s8 = int_to_ptr.vmem [resolvable:$true] %s20_s8 }
   0x8   :  { %26 = dma.hbm_to_vmem [thread:$0]  %s19_s28, 256, %s21_s8, [#allocation3], %s341_s29, %s341_s29, %s342_s30  }
   0x9   :  { %s48_s11 = sshll.u32 %s344_s0, 4  ;;  %s49_s11 = int_to_ptr.vmem [resolvable:$true] %s48_s11 }
   0xa   :  { %54 = dma.hbm_to_vmem [thread:$0]  %s47_s1, 256, %s49_s11, [#allocation6], %s341_s29, %s341_s29, %s342_s30  }
   0xb   :  { %334 = dma.done.wait [#allocation3], 256  }
   0xc   :  { %335 = vsyncadd [#allocation3], 4294967040 }
   0xd   :  { %336 = dma.done.wait [#allocation6], 768  }
   0xe   :  { %337 = vsyncadd [#allocation6], 4294966528  ;;  %vm83_vm0 = vcmask 261120   ;;  %v76_v0 = vld [vmem:[#allocation5 + $0x18] sm:$0xff]  ;;  %v75_v1 = vld [vmem:[#allocation5 + $0x10] sm:$0xff]  ;;  %v345_v17 = vmov 32.0  }
   0xf   :  { %212 = vmatpush.xpose.msk.msra.mxu0 %vm83_vm0, %v76_v0  ;;  %218 = vmatpush.xpose.msk.msra.mxu1 %vm83_vm0, %v76_v0  ;;  %v74_v2 = vld [vmem:[#allocation5 + $0x8] sm:$0xff]  ;;  %v73_v3 = vld [vmem:[#allocation5] sm:$0xff]  ;;  %v71_v4 = vld [vmem:[#allocation2] sm:$0xff]  ;;  %232 = vrcp.f32 %v345_v17  ;;  %s198_s19 = sshll.u32 %s437_s6, 4  ;;  %s199_s19 = int_to_ptr.hbm [resolvable:$true] %s198_s19 }
  0x10   :  { %v72_v5 = vld [vmem:[#allocation2 + $0x8] sm:$0xff]  ;;  %v229_v6 = vld [vmem:[%s433_s2] ss:$0 sm:$0xff]  ;;  %v125_v8 = vld [vmem:[#allocation7] sm:$0xff] }
  0x11   :  { %v126_v13 = vld [vmem:[#allocation7 + $0x8] sm:$0xff]  ;;  %v230_v48 = vld [vmem:[%s435_s4] ss:$0 sm:$0xff]  ;;  %s346_s4 = smov [#allocation8]  }
  0x12   :  { %v231_v52 = vld [vmem:[%s436_s5] ss:$0 sm:$0xff]  ;;  %s196_s16 = sshll.u32 %s346_s4, 4  ;;  %s197_s16 = int_to_ptr.vmem [resolvable:$true] %s196_s16 }
  0x13   :  { %213 = vmatpush.xpose.msk.msra.mxu0 %vm83_vm0, %v75_v1  ;;  %219 = vmatpush.xpose.msk.msra.mxu1 %vm83_vm0, %v75_v1 }
  0x15   :  { %v233_v18 = vpop.eup %232 }
  0x16   :  { %v136_v19 = vmul.f32 32.0, %v233_v18  ;;  %vm140_vm1 = vweird.f32 %v233_v18 }
  0x17   :  { %214 = vmatpush.xpose.msk.msra.mxu0 %vm83_vm0, %v74_v2  ;;  %220 = vmatpush.xpose.msk.msra.mxu1 %vm83_vm0, %v74_v2 }
  0x18   :  { %v137_v20 = vsub.f32 1.0, %v136_v19 }
  0x1a   :  { %v138_v21 = vmul.f32 %v233_v18, %v137_v20 }
  0x1b   :  { %215 = vmatpush.xpose.msk.msra.mxu0 %vm83_vm0, %v73_v3  ;;  %221 = vmatpush.xpose.msk.msra.mxu1 %vm83_vm0, %v73_v3 }
  0x1c   :  { %v139_v22 = vadd.f32 %v233_v18, %v138_v21 }
  0x1e   :  { %216 = vmatmul.msk.f32.vlgmr.msra.gmra.mxu0 %vm83_vm0, %v71_v4  ;;  %217 = vmatmul.msk.f32.vlgmr.msra.gmra.mxu1 %vm83_vm0, %v72_v5  ;;  %v141_v23 = vsel %vm140_vm1, %v233_v18, %v139_v22 }
  0x9b   :  { %v119_v7 = vpop.f32.mrf.mxu0  ;;  %v122_v9 = vpop.f32.mrf.mxu1 }
  0x9c   :  { %v120_v10 = vadd.f32 %v229_v6, %v119_v7  ;;  %v123_v12 = vadd.f32 %v229_v6, %v122_v9 }
  0x9e   :  { %v127_v11 = vadd.f32 %v125_v8, %v120_v10  ;;  %v128_v15 = vadd.f32 %v126_v13, %v123_v12 }
  0xa0   :  { %v129_v14 = vsel %vm83_vm0, %v127_v11, 0.0  ;;  %v132_v16 = vsel %vm83_vm0, %v128_v15, 0.0 }
  0xa1   :  { %130 = vadd.xlane.f32.xlu0 %v129_v14 }
  0xa9   :  { %133 = vadd.xlane.f32.xlu0 %v132_v16 }
 0x114   :  { %v131_v24 = vpop.xlane.xlu0 %130 }
 0x115   :  { %v142_v25 = vmul.f32 %v141_v23, %v131_v24 }
 0x117   :  { %v144_v26 = vsub.f32 %v127_v11, %v142_v25 }
 0x119   :  { %v146_v27 = vmul.f32 %v144_v26, %v144_v26 }
 0x11b   :  { %v148_v28 = vsel %vm83_vm0, %v146_v27, 0.0 }
 0x11c   :  { %149 = vadd.xlane.f32.xlu1 %v148_v28  ;;  %v134_v29 = vpop.xlane.xlu0 %133 }
 0x11d   :  { %v143_v30 = vmul.f32 %v141_v23, %v134_v29 }
 0x11f   :  { %v145_v31 = vsub.f32 %v128_v15, %v143_v30 }
 0x121   :  { %v147_v32 = vmul.f32 %v145_v31, %v145_v31 }
 0x123   :  { %v151_v33 = vsel %vm83_vm0, %v147_v32, 0.0 }
 0x124   :  { %152 = vadd.xlane.f32.xlu1 %v151_v33 }
 0x18f   :  { %v150_v34 = vpop.xlane.xlu1 %149 }
 0x190   :  { %v154_v35 = vmul.f32 %v150_v34, %v141_v23 }
 0x192   :  { %v156_v36 = vadd.f32 1e-12, %v154_v35 }
 0x194   :  { %234 = vrsqrt.f32 %v156_v36  ;;  %vm164_vm3 = vweird.f32 %v156_v36 }
 0x197   :  { %v153_v37 = vpop.xlane.xlu1 %152 }
 0x198   :  { %v155_v38 = vmul.f32 %v153_v37, %v141_v23 }
 0x19a   :  { %v235_v39 = vpop.eup %234  ;;  %v157_v40 = vadd.f32 1e-12, %v155_v38 }
 0x19b   :  { %v159_v41 = vmul.f32 %v235_v39, %v156_v36  ;;  %vm165_vm2 = vweird.f32 %v235_v39 }
 0x19c   :  { %236 = vrsqrt.f32 %v157_v40  ;;  %vm166_vm4 = vmor %vm164_vm3, %vm165_vm2  ;;  %vm174_vm6 = vweird.f32 %v157_v40 }
 0x19d   :  { %v160_v42 = vmul.f32 %v235_v39, %v159_v41 }
 0x19f   :  { %v161_v43 = vmul.f32 0.5, %v160_v42 }
 0x1a1   :  { %v162_v44 = vsub.f32 1.5, %v161_v43 }
 0x1a2   :  { %v237_v45 = vpop.eup %236 }
 0x1a3   :  { %v163_v46 = vmul.f32 %v235_v39, %v162_v44  ;;  %v169_v47 = vmul.f32 %v237_v45, %v157_v40  ;;  %vm175_vm5 = vweird.f32 %v237_v45 }
 0x1a4   :  { %vm176_vm7 = vmor %vm174_vm6, %vm175_vm5 }
 0x1a5   :  { %v167_v49 = vsel %vm166_vm4, %v235_v39, %v163_v46  ;;  %v170_v50 = vmul.f32 %v237_v45, %v169_v47 }
 0x1a6   :  { %v178_v51 = vmul.f32 %v167_v49, %v144_v26 }
 0x1a7   :  { %v171_v53 = vmul.f32 0.5, %v170_v50 }
 0x1a8   :  { %v183_v54 = vmul.f32 %v230_v48, %v178_v51 }
 0x1a9   :  { %v172_v55 = vsub.f32 1.5, %v171_v53 }
 0x1aa   :  { %v188_v56 = vadd.f32 %v231_v52, %v183_v54 }
 0x1ab   :  { %v173_v57 = vmul.f32 %v237_v45, %v172_v55 }
 0x1ac   :  { %190 = vst.msk [vmem:[#allocation8] sm:$0xff] %vm83_vm0, %v188_v56 }
 0x1ad   :  { %v177_v58 = vsel %vm176_vm7, %v237_v45, %v173_v57 }
 0x1ae   :  { %v179_v59 = vmul.f32 %v177_v58, %v145_v31 }
 0x1b0   :  { %v184_v60 = vmul.f32 %v230_v48, %v179_v59 }
 0x1b2   :  { %v189_v61 = vadd.f32 %v231_v52, %v184_v60 }
 0x1b4   :  { %191 = vst.msk [vmem:[#allocation8 + $0x8] sm:$0xff] %vm83_vm0, %v189_v61 }
 0x1b5   :  { %204 = dma.vmem_to_hbm [thread:$0]  %s197_s16, 256, %s199_s19, [#allocation4], %s341_s29, %s341_s29, %s342_s30  }
 0x1b6   :  { %338 = dma.done.wait [#allocation4], 256  }
 0x1b7   :  { %339 = vsyncadd [#allocation4], 4294967040 }
 0x1b8   :  { %209 = vsyncpa [#allocation3], 1 }
 0x1b9   :  { %210 = vsyncpa [#allocation6], 1 }
 0x1ba   :  { %211 = vsyncpa [#allocation4], 1 }

</bundles_post_ra>
